<compile_context>
chip_gen: v6e
topology: v6e:2x2x1
jax: 0.10.0
libtpu: 0.0.40
codegen_flags: <defaults>
</compile_context>

<pallas_src>
import functools
from typing import NamedTuple

import numpy as np

import jax
import jax.numpy as jnp
from jax import lax
from jax.experimental import pallas as pl
from jax.experimental.pallas import tpu as pltpu

LANE = 128          # lane-dense feature / hidden width
NT_DIMS = (((1,), (1,)), ((), ()))   # dot_general "A @ B.T" dimension numbers


def _round_up(n, m):
    return (n + m - 1) // m * m


class DiscCfg(NamedTuple):
    n_layers: int
    z_dim: int
    x_dim: int
    emb_rows: int
    w_rows: int
    one_col: int
    wt_off: int
    emb_off: int
    zp_off: int
    xp_off: int
    slab_rows: int


# ----------------------------------------------------------------------------
# Pallas kernel: feature assembly (gather + concat) + full MLP + sigmoid
# ----------------------------------------------------------------------------
def _build_kernel(cfg: DiscCfg, bb: int):
    n_layers = cfg.n_layers
    W_ROWS, EMB_ROWS = cfg.w_rows, cfg.emb_rows
    wt_off, emb_off, zp_off, xp_off = cfg.wt_off, cfg.emb_off, cfg.zp_off, cfg.xp_off
    z_dim, x_dim = cfg.z_dim, cfg.x_dim

    def kernel(y_ref, z_ref, x_ref, p_ref, out_ref):
        # ---- fused glue: embedding gather + concat, as lane-dense bf16 matmuls ----
        # Embedding rows are stored pre-shifted into their feature columns and also
        # carry the constant 1.0 in the "bias lane" (ONE_COL), so feat gets its
        # ones-lane for free from the one-hot matmul.
        onehot = (lax.broadcasted_iota(jnp.int32, (bb, EMB_ROWS), 1)
                  == y_ref[...]).astype(jnp.bfloat16)                       # (bb, 16)
        feat = jnp.dot(onehot, p_ref[emb_off:emb_off + EMB_ROWS, :],
                       preferred_element_type=jnp.float32)                  # (bb, 128)
        # Identity "placement" matrices scatter z and x into their feature columns.
        feat = feat + jnp.dot(z_ref[...].astype(jnp.bfloat16),
                              p_ref[zp_off:zp_off + z_dim, :],
                              preferred_element_type=jnp.float32)
        feat = feat + jnp.dot(x_ref[...].astype(jnp.bfloat16),
                              p_ref[xp_off:xp_off + x_dim, :],
                              preferred_element_type=jnp.float32)

        # ---- n_layers x (Linear + ReLU); bias folded into weight row ONE_COL, so
        #      each layer is a single K=W_ROWS bf16 matmul + f32 ReLU.
        h = feat                                                            # (bb, 128) f32
        for i in range(n_layers):
            w = p_ref[i * W_ROWS:(i + 1) * W_ROWS, :]                       # (W_ROWS,128) bf16
            h = jnp.dot(h[:, :W_ROWS].astype(jnp.bfloat16), w,
                        preferred_element_type=jnp.float32)
            h = jnp.maximum(h, 0.0)

        # ---- final Linear(hidden,1) + Sigmoid, transposed: batch lands on lanes so
        #      the output tile is a lane-dense (1, bb) instead of (bb, 128).
        wt = p_ref[wt_off:wt_off + 16, :]            # row 0 = [w_last^T | b_last @ ONE_COL]
        logits_t = lax.dot_general(wt, h.astype(jnp.bfloat16), NT_DIMS,
                                   preferred_element_type=jnp.float32)      # (16, bb)
        row = logits_t[0:1, :]
        # Sigmoid via EUP exp + approximate reciprocal (separate VLIW slots, no divide).
        out_ref[...] = pl.reciprocal(1.0 + jnp.exp(-row), approx=True)

    return kernel


@functools.partial(jax.jit, static_argnames=("cfg",))
def discriminator_forward(param_slab, z, y, x, cfg: DiscCfg):
    B = z.shape[0]
    z2 = z.reshape(B, -1).astype(jnp.float32)   # free bitcast reshape
    x2 = x.reshape(B, -1).astype(jnp.float32)
    y2 = y.reshape(B, 1).astype(jnp.int32)

    # Batch block: bigger blocks amortize the ~0.35us per-grid-step overhead.
    # Capped at 256 so the unrolled layer loop's live f32 activation tiles stay
    # modest; go to a fori_loop body before raising this further.
    if B >= 512 and B % 256 == 0:
        bb = 256
    elif B >= 256 and B % 128 == 0:
        bb = 128
    else:
        bb = B
    grid = (B // bb,)
    R = cfg.slab_rows

    flops = 2 * B * LANE * (cfg.emb_rows + cfg.z_dim + cfg.x_dim
                            + cfg.n_layers * cfg.w_rows + 16)
    bytes_accessed = (R * LANE * 2                       # bf16 slab
                      + B * (cfg.z_dim + cfg.x_dim + 2) * 4)  # z, x, y, out

    out = pl.pallas_call(
        _build_kernel(cfg, bb),
        out_shape=jax.ShapeDtypeStruct((1, B), jnp.float32),
        grid=grid,
        in_specs=[
            pl.BlockSpec((bb, 1), lambda i: (i, 0)),            # y (int32)
            pl.BlockSpec((bb, cfg.z_dim), lambda i: (i, 0)),    # z flattened
            pl.BlockSpec((bb, cfg.x_dim), lambda i: (i, 0)),    # x flattened
            pl.BlockSpec((R, LANE), lambda i: (0, 0)),          # packed bf16 params (resident)
        ],
        out_specs=pl.BlockSpec((1, bb), lambda i: (0, i)),      # lane-dense, batch on lanes
        compiler_params=pltpu.CompilerParams(
            dimension_semantics=("parallel",)),
        cost_estimate=pl.CostEstimate(
            flops=flops, transcendentals=B, bytes_accessed=bytes_accessed),
    )(y2, z2, x2, param_slab)
    # (1, B) -> (B, 1): contiguous reshape (bitcast), no slice op, no 64 KiB readback.
    return out.reshape(B, 1)


# ----------------------------------------------------------------------------
# Discriminator wrapper: parameter construction + compact packed-slab layout
# ----------------------------------------------------------------------------
class DiscriminatorPallas:
    def __init__(self, latent_dim, n_comps, hidden_dim, n_layers,
                 activation="ReLU", **kwargs):
        # TODO(synk): only the ReLU / use_original_x / use_invariant_y / embed_y
        # configuration of the reference module is wired into the fused kernel.
        assert activation == "ReLU"
        assert kwargs["use_original_x"] and kwargs["use_invariant_y"] and kwargs["embed_y"]

        self.n_layers = n_layers
        z_dim = latent_dim * n_comps
        x_dim = kwargs["input_dim"] * n_comps
        y_classes = kwargs["y_classes"]
        y_embed_dim = kwargs["y_embed_dim"]
        input_dim = z_dim + y_embed_dim + x_dim
        self.input_dim = input_dim

        max_dim = max(input_dim, hidden_dim)
        assert max_dim < LANE, "fused kernel assumes feature/hidden width < 128"

        one_col = max_dim                        # constant-one pad lane carrying biases
        w_rows = _round_up(max_dim + 1, 16)      # bf16-aligned contraction rows / layer
        emb_rows = _round_up(y_classes, 16)
        zp_rows = _round_up(z_dim, 16)
        xp_rows = _round_up(x_dim, 16)
        wt_off = n_layers * w_rows
        emb_off = wt_off + 16
        zp_off = emb_off + emb_rows
        xp_off = zp_off + zp_rows
        rows = xp_off + xp_rows

        # Deterministic synthetic parameters (not a checkpoint).
        key = jax.random.PRNGKey(1234)
        dims = [input_dim] + [hidden_dim] * n_layers + [1]
        self.weights, self.biases = [], []
        for i in range(len(dims) - 1):
            key, kw, kb = jax.random.split(key, 3)
            scale = 1.0 / float(np.sqrt(dims[i]))
            self.weights.append(
                jax.random.normal(kw, (dims[i], dims[i + 1]), jnp.float32) * scale)
            self.biases.append(
                jax.random.normal(kb, (dims[i + 1],), jnp.float32) * 0.01)
        key, ke = jax.random.split(key)
        self.y_embedding = jax.random.normal(ke, (y_classes, y_embed_dim), jnp.float32)

        # ---- pack everything into ONE compact bf16 slab (built in f32, cast once) ----
        slab = np.zeros((rows, LANE), np.float32)
        # Hidden Linear blocks: bias in row ONE_COL; 1.0 at [ONE_COL, ONE_COL] so the
        # constant-one activation lane propagates through ReLU to the next layer.
        for i in range(n_layers):
            w = np.asarray(self.weights[i])
            b = np.asarray(self.biases[i])
            di, do = w.shape
            blk = slab[i * w_rows:(i + 1) * w_rows]
            blk[:di, :do] = w
            blk[one_col, :do] = b
            blk[one_col, one_col] = 1.0
        # Final Linear(hidden, 1), stored transposed; its bias sits at column ONE_COL.
        wl = np.asarray(self.weights[n_layers])             # (hidden, 1)
        slab[wt_off, :wl.shape[0]] = wl[:, 0]
        slab[wt_off, one_col] = float(np.asarray(self.biases[n_layers])[0])
        # Embedding table, pre-shifted into the y-embedding feature columns; every
        # class row also injects the constant 1 into the ONE_COL lane of `feat`.
        slab[emb_off:emb_off + y_classes,
             z_dim:z_dim + y_embed_dim] = np.asarray(self.y_embedding)
        slab[emb_off:emb_off + y_classes, one_col] = 1.0
        # Identity "placement" matrices scattering z / x into their feature columns.
        slab[zp_off:zp_off + z_dim, 0:z_dim] = np.eye(z_dim, dtype=np.float32)
        x_col = z_dim + y_embed_dim
        slab[xp_off:xp_off + x_dim, x_col:x_col + x_dim] = np.eye(x_dim, dtype=np.float32)
        self.param_slab = jnp.asarray(slab, dtype=jnp.bfloat16)

        self._cfg = DiscCfg(n_layers=n_layers, z_dim=z_dim, x_dim=x_dim,
                            emb_rows=emb_rows, w_rows=w_rows, one_col=one_col,
                            wt_off=wt_off, emb_off=emb_off, zp_off=zp_off,
                            xp_off=xp_off, slab_rows=rows)

    def __call__(self, z, y=None, x=None):
        # TODO(synk): optional y/x (or embed_y=False) forward branches are not fused.
        assert y is not None and x is not None
        return discriminator_forward(self.param_slab, z, y, x, cfg=self._cfg)


# ----------------------------------------------------------------------------
# Pure-JAX reference for the correctness check
# ----------------------------------------------------------------------------
def mlp_ref(feat, weights, biases, n_layers):
    h = feat
    for i in range(n_layers):
        h = jnp.maximum(h @ weights[i] + biases[i], 0.0)
    logits = h @ weights[n_layers] + biases[n_layers]
    return jax.nn.sigmoid(logits)


if __name__ == "__main__":
    latent_dim, n_comps, hidden_dim, n_layers = 4, 2, 32, 3
    x_dim_raw, y_classes, y_embed_dim = 4, 10, 8
    B = 128   # multiple of 8; amortizes the fixed per-call overhead

    disc = DiscriminatorPallas(
        latent_dim, n_comps, hidden_dim, n_layers, activation="ReLU",
        use_original_x=True, input_dim=x_dim_raw,
        use_invariant_y=True, embed_y=True,
        y_classes=y_classes, y_embed_dim=y_embed_dim,
    )

    key = jax.random.PRNGKey(0)
    kz, ky, kx = jax.random.split(key, 3)
    z = jax.random.normal(kz, (B, n_comps, latent_dim), jnp.float32)
    y = jax.random.randint(ky, (B,), 0, y_classes)
    x = jax.random.normal(kx, (B, n_comps, x_dim_raw), jnp.float32)

    validity = disc(z, y=y, x=x)
    validity = jax.block_until_ready(validity)
    assert validity.shape == (B, 1), validity.shape

    # Cross-check against the plain-JAX f32 reference (same ordering: [z | emb(y) | x]).
    feat = jnp.concatenate(
        [z.reshape(B, -1), jnp.take(disc.y_embedding, y, axis=0), x.reshape(B, -1)],
        axis=-1)
    ref = mlp_ref(feat, disc.weights, disc.biases, n_layers)
    # atol covers bf16 parameter/operand storage + the approximate EUP reciprocal.
    err = float(jnp.max(jnp.abs(validity - ref)))
    assert err < 1e-2, err

    print("KERNEL_OK")
</pallas_src>

<mosaic_0001>
module attributes {stable_mosaic.version = 11 : i64} {
  func.func @kernel(%arg0: i32, %arg1: memref<128x1xi32, #tpu.memory_space<vmem>>, %arg2: memref<128x8xf32, #tpu.memory_space<vmem>>, %arg3: memref<128x8xf32, #tpu.memory_space<vmem>>, %arg4: memref<208x128xbf16, #tpu.memory_space<vmem>>, %arg5: memref<1x128xf32, #tpu.memory_space<vmem>>) attributes {dimension_semantics = [#tpu.dimension_semantics<parallel>], iteration_bounds = array<i64: 1>, scalar_prefetch = 0 : i64, scratch_operands = 0 : i64, tpu.core_type = #tpu.core_type<tc>, window_params = [{transform_indices = @transform_0, window_bounds = array<i64: 128, 1>}, {transform_indices = @transform_1, window_bounds = array<i64: 128, 8>}, {transform_indices = @transform_2, window_bounds = array<i64: 128, 8>}, {pipeline_mode = #tpu.pipeline_mode<synchronous>, transform_indices = @transform_3, window_bounds = array<i64: 208, 128>}, {transform_indices = @transform_4, window_bounds = array<i64: 1, 128>}]} {
    %0 = tpu.iota {dimensions = array<i32: 1>} : vector<128x16xi32>
    %c0 = arith.constant 0 : index
    %c0_0 = arith.constant 0 : index
    %1 = vector.load %arg1[%c0, %c0_0] : memref<128x1xi32, #tpu.memory_space<vmem>>, vector<128x1xi32>
    %2 = vector.broadcast %1 : vector<128x1xi32> to vector<128x16xi32>
    %3 = arith.cmpi eq, %0, %2 : vector<128x16xi32>
    %4 = arith.extui %3 : vector<128x16xi1> to vector<128x16xi32>
    %5 = arith.sitofp %4 : vector<128x16xi32> to vector<128x16xf32>
    %6 = arith.truncf %5 : vector<128x16xf32> to vector<128x16xbf16>
    %c160 = arith.constant 160 : index
    %c0_1 = arith.constant 0 : index
    %7 = vector.load %arg4[%c160, %c0_1] : memref<208x128xbf16, #tpu.memory_space<vmem>>, vector<16x128xbf16>
    %cst = arith.constant dense<0.000000e+00> : vector<128x128xf32>
    %8 = tpu.matmul %6, %7, %cst {dimension_numbers = #tpu.dot_dimension_numbers<[1], [0], [0], [1], [0, 0, 1, 1], [], []>} : vector<128x16xbf16>, vector<16x128xbf16>, vector<128x128xf32> -> vector<128x128xf32>
    %c0_2 = arith.constant 0 : index
    %c0_3 = arith.constant 0 : index
    %9 = vector.load %arg2[%c0_2, %c0_3] : memref<128x8xf32, #tpu.memory_space<vmem>>, vector<128x8xf32>
    %10 = arith.truncf %9 : vector<128x8xf32> to vector<128x8xbf16>
    %c176 = arith.constant 176 : index
    %c0_4 = arith.constant 0 : index
    %11 = vector.load %arg4[%c176, %c0_4] : memref<208x128xbf16, #tpu.memory_space<vmem>>, vector<8x128xbf16>
    %cst_5 = arith.constant dense<0.000000e+00> : vector<128x128xf32>
    %12 = tpu.matmul %10, %11, %cst_5 {dimension_numbers = #tpu.dot_dimension_numbers<[1], [0], [0], [1], [0, 0, 1, 1], [], []>} : vector<128x8xbf16>, vector<8x128xbf16>, vector<128x128xf32> -> vector<128x128xf32>
    %13 = arith.addf %8, %12 : vector<128x128xf32>
    %c0_6 = arith.constant 0 : index
    %c0_7 = arith.constant 0 : index
    %14 = vector.load %arg3[%c0_6, %c0_7] : memref<128x8xf32, #tpu.memory_space<vmem>>, vector<128x8xf32>
    %15 = arith.truncf %14 : vector<128x8xf32> to vector<128x8xbf16>
    %c192 = arith.constant 192 : index
    %c0_8 = arith.constant 0 : index
    %16 = vector.load %arg4[%c192, %c0_8] : memref<208x128xbf16, #tpu.memory_space<vmem>>, vector<8x128xbf16>
    %cst_9 = arith.constant dense<0.000000e+00> : vector<128x128xf32>
    %17 = tpu.matmul %15, %16, %cst_9 {dimension_numbers = #tpu.dot_dimension_numbers<[1], [0], [0], [1], [0, 0, 1, 1], [], []>} : vector<128x8xbf16>, vector<8x128xbf16>, vector<128x128xf32> -> vector<128x128xf32>
    %18 = arith.addf %13, %17 : vector<128x128xf32>
    %c0_10 = arith.constant 0 : index
    %c0_11 = arith.constant 0 : index
    %19 = vector.load %arg4[%c0_10, %c0_11] : memref<208x128xbf16, #tpu.memory_space<vmem>>, vector<48x128xbf16>
    %20 = vector.extract_strided_slice %18 {offsets = [0, 0], sizes = [128, 48], strides = [1, 1]} : vector<128x128xf32> to vector<128x48xf32>
    %21 = arith.truncf %20 : vector<128x48xf32> to vector<128x48xbf16>
    %cst_12 = arith.constant dense<0.000000e+00> : vector<128x128xf32>
    %22 = tpu.matmul %21, %19, %cst_12 {dimension_numbers = #tpu.dot_dimension_numbers<[1], [0], [0], [1], [0, 0, 1, 1], [], []>} : vector<128x48xbf16>, vector<48x128xbf16>, vector<128x128xf32> -> vector<128x128xf32>
    %cst_13 = arith.constant 0.000000e+00 : f32
    %23 = vector.broadcast %cst_13 : f32 to vector<128x128xf32>
    %24 = arith.maximumf %22, %23 : vector<128x128xf32>
    %c48 = arith.constant 48 : index
    %c0_14 = arith.constant 0 : index
    %25 = vector.load %arg4[%c48, %c0_14] : memref<208x128xbf16, #tpu.memory_space<vmem>>, vector<48x128xbf16>
    %26 = vector.extract_strided_slice %24 {offsets = [0, 0], sizes = [128, 48], strides = [1, 1]} : vector<128x128xf32> to vector<128x48xf32>
    %27 = arith.truncf %26 : vector<128x48xf32> to vector<128x48xbf16>
    %cst_15 = arith.constant dense<0.000000e+00> : vector<128x128xf32>
    %28 = tpu.matmul %27, %25, %cst_15 {dimension_numbers = #tpu.dot_dimension_numbers<[1], [0], [0], [1], [0, 0, 1, 1], [], []>} : vector<128x48xbf16>, vector<48x128xbf16>, vector<128x128xf32> -> vector<128x128xf32>
    %cst_16 = arith.constant 0.000000e+00 : f32
    %29 = vector.broadcast %cst_16 : f32 to vector<128x128xf32>
    %30 = arith.maximumf %28, %29 : vector<128x128xf32>
    %c96 = arith.constant 96 : index
    %c0_17 = arith.constant 0 : index
    %31 = vector.load %arg4[%c96, %c0_17] : memref<208x128xbf16, #tpu.memory_space<vmem>>, vector<48x128xbf16>
    %32 = vector.extract_strided_slice %30 {offsets = [0, 0], sizes = [128, 48], strides = [1, 1]} : vector<128x128xf32> to vector<128x48xf32>
    %33 = arith.truncf %32 : vector<128x48xf32> to vector<128x48xbf16>
    %cst_18 = arith.constant dense<0.000000e+00> : vector<128x128xf32>
    %34 = tpu.matmul %33, %31, %cst_18 {dimension_numbers = #tpu.dot_dimension_numbers<[1], [0], [0], [1], [0, 0, 1, 1], [], []>} : vector<128x48xbf16>, vector<48x128xbf16>, vector<128x128xf32> -> vector<128x128xf32>
    %cst_19 = arith.constant 0.000000e+00 : f32
    %35 = vector.broadcast %cst_19 : f32 to vector<128x128xf32>
    %36 = arith.maximumf %34, %35 : vector<128x128xf32>
    %c144 = arith.constant 144 : index
    %c0_20 = arith.constant 0 : index
    %37 = vector.load %arg4[%c144, %c0_20] : memref<208x128xbf16, #tpu.memory_space<vmem>>, vector<16x128xbf16>
    %38 = arith.truncf %36 : vector<128x128xf32> to vector<128x128xbf16>
    %cst_21 = arith.constant dense<0.000000e+00> : vector<16x128xf32>
    %39 = tpu.matmul %37, %38, %cst_21 {dimension_numbers = #tpu.dot_dimension_numbers<[1], [1], [0], [0], [0, 0, 1, 0], [], []>} : vector<16x128xbf16>, vector<128x128xbf16>, vector<16x128xf32> -> vector<16x128xf32>
    %40 = vector.extract_strided_slice %39 {offsets = [0, 0], sizes = [1, 128], strides = [1, 1]} : vector<16x128xf32> to vector<1x128xf32>
    %cst_22 = arith.constant 0.000000e+00 : f32
    %41 = vector.broadcast %cst_22 : f32 to vector<1x128xf32>
    %42 = arith.subf %41, %40 : vector<1x128xf32>
    %43 = math.exp %42 : vector<1x128xf32>
    %cst_23 = arith.constant 1.000000e+00 : f32
    %44 = vector.broadcast %cst_23 : f32 to vector<1x128xf32>
    %45 = arith.addf %44, %43 : vector<1x128xf32>
    %46 = tpu.reciprocal %45 {approx = true} : vector<1x128xf32> -> vector<1x128xf32>
    %c0_24 = arith.constant 0 : index
    %c0_25 = arith.constant 0 : index
    %47 = vector.load %arg5[%c0_24, %c0_25] : memref<1x128xf32, #tpu.memory_space<vmem>>, vector<1x128xf32>
    tpu.vector_store %arg5[%c0_24, %c0_25], %46 {strides = array<i32>} : memref<1x128xf32, #tpu.memory_space<vmem>>, vector<1x128xf32>,
    return
  }
  func.func @transform_0(%arg0: i32) -> (i32, i32) {
    %c0_i32 = arith.constant 0 : i32
    %c0_i32_0 = arith.constant 0 : i32
    return %arg0, %c0_i32 : i32, i32
  }
  func.func @transform_1(%arg0: i32) -> (i32, i32) {
    %c0_i32 = arith.constant 0 : i32
    %c0_i32_0 = arith.constant 0 : i32
    return %arg0, %c0_i32 : i32, i32
  }
  func.func @transform_2(%arg0: i32) -> (i32, i32) {
    %c0_i32 = arith.constant 0 : i32
    %c0_i32_0 = arith.constant 0 : i32
    return %arg0, %c0_i32 : i32, i32
  }
  func.func @transform_3(%arg0: i32) -> (i32, i32) {
    %c0_i32 = arith.constant 0 : i32
    %c0_i32_0 = arith.constant 0 : i32
    %c0_i32_1 = arith.constant 0 : i32
    return %c0_i32, %c0_i32_0 : i32, i32
  }
  func.func @transform_4(%arg0: i32) -> (i32, i32) {
    %c0_i32 = arith.constant 0 : i32
    %c0_i32_0 = arith.constant 0 : i32
    return %c0_i32, %arg0 : i32, i32
  }
}

</mosaic_0001>

<bundles_post_ra>
// kernel: discriminator_forward.1
= control target key start
LH: loop header
LB: loop body
LE: loop exit
PB: predicated region body
PF: predicated region fallthrough
CT: control target
= control target key end

     0   :  { %v1503_v2 = vmov 0   ;;  %vm193_vm0 = vcmask 1043456   ;;  %vm168_vm1 = vcmask 64512   ;;  %s1823_s0 = inlined_call_operand.vmem [shape: s32[128,1], index: 0, kind: input, shape index: {}]   ;;  %s1824_s1 = inlined_call_operand.vmem [shape: f32[128,8], index: 1, kind: input, shape index: {}]   ;;  %s1825_s2 = inlined_call_operand.vmem [shape: f32[128,8], index: 2, kind: input, shape index: {}]   ;;  %s1826_s3 = inlined_call_operand.vmem [shape: bf16[208,128], index: 3, kind: input, shape index: {}]   ;;  %s1827_s4 = inlined_call_operand.hbm [shape: f32[1,128], index: 4, kind: output, shape index: {}]  }
   0x1   :  { %v23_v0 = vld [vmem:[%s1823_s0 + $0x10] sm:$0xff]  ;;  %v21_v1 = vld [vmem:[%s1823_s0] sm:$0xff]  ;;  %1465 = vset.pattern.permute.xlu1 %v1503_v2  ;;  %1464 = vset.pattern.permute.xlu0 %v1503_v2  ;;  %v24_v3 = vld [vmem:[%s1823_s0 + $0x18] sm:$0xff] }
   0x2   :  { %44 = vperm.xlu1 %1465, %v23_v0   ;;  %38 = vperm.xlu0 %1464, %v21_v1   ;;  %v22_v4 = vld [vmem:[%s1823_s0 + $0x8] sm:$0xff]  ;;  %v25_v6 = vld [vmem:[%s1823_s0 + $0x20] sm:$0xff]  ;;  %v167_v7 = vld [vmem:[%s1826_s3 + $0x58] sm:$0xf] }
   0x3   :  { %v26_v5 = vld [vmem:[%s1823_s0 + $0x28] sm:$0xff]  ;;  %v147_v8 = vld [vmem:[%s1824_s1 + $0x20] sm:$0xff]  ;;  %v195_v9 = vsel %vm193_vm0, %v167_v7, 0  ;;  %v149_v11 = vld [vmem:[%s1824_s1 + $0x30] sm:$0xff]  ;;  %1458 = vmatprep.subr.msk.bf16.mxu1 %vm193_vm0, %v167_v7  ;;  %1457 = vmatprep.subr.msk.bf16.mxu0 %vm193_vm0, %v167_v7 }
   0x4   :  { %v148_v10 = vld [vmem:[%s1824_s1 + $0x28] sm:$0xff]  ;;  %v150_v12 = vld [vmem:[%s1824_s1 + $0x38] sm:$0xff]  ;;  %v1466_v15 = vld [vmem:[%s1826_s3 + $0x50] sm:$0xff]   ;;  %1456 = vmatpush3.bf16.msra.mxu1 %v195_v9  ;;  %1316 = vmatpush3.bf16.msra.mxu0 %v195_v9 }
   0x5   :  { %v161_v13 = vpack.c.bf16 %v148_v10, %v147_v8  ;;  %v162_v14 = vpack.c.bf16 %v150_v12, %v149_v11  ;;  %v151_v16 = vld [vmem:[%s1824_s1 + $0x40] sm:$0xff]  ;;  %v152_v17 = vld [vmem:[%s1824_s1 + $0x48] sm:$0xff]  ;;  %v28_v18 = vld [vmem:[%s1823_s0 + $0x38] sm:$0xff]  ;;  %1333 = vmatprep.subr.bf16.mxu1 %v1466_v15 }
   0x6   :  { %47 = vperm.xlu1 %1465, %v24_v3   ;;  %41 = vperm.xlu0 %1464, %v22_v4   ;;  %v27_v19 = vld [vmem:[%s1823_s0 + $0x30] sm:$0xff]  ;;  %v163_v20 = vpack.c.bf16 %v152_v17, %v151_v16  ;;  %v154_v22 = vld [vmem:[%s1824_s1 + $0x58] sm:$0xff]  ;;  %v143_v23 = vld [vmem:[%s1824_s1] sm:$0xff] }
   0x7   :  { %1321 = vmatprep.mubr.msk.bf16.mxu1 %vm168_vm1, %v161_v13  ;;  %v153_v21 = vld [vmem:[%s1824_s1 + $0x50] sm:$0xff]  ;;  %v144_v24 = vld [vmem:[%s1824_s1 + $0x8] sm:$0xff]  ;;  %v146_v26 = vld [vmem:[%s1824_s1 + $0x18] sm:$0xff] }
   0x8   :  { %1322 = vmatmul.mubr.msk.bf16.vlgmr.msra.gmra.mxu1 %vm168_vm1, %v162_v14  ;;  %v145_v25 = vld [vmem:[%s1824_s1 + $0x10] sm:$0xff]  ;;  %v159_v27 = vpack.c.bf16 %v144_v24, %v143_v23  ;;  %v446_v29 = vld [vmem:[%s1826_s3 + $0x60] sm:$0xf]  ;;  %v423_v31 = vld [vmem:[%s1825_s2 + $0x8] sm:$0xff]  ;;  %v164_v38 = vpack.c.bf16 %v154_v22, %v153_v21 }
   0x9   :  { %1334 = vmatpush3.bf16.msra.mxu1 %v1466_v15  ;;  %1325 = vmatprep.mubr.msk.bf16.mxu1 %vm168_vm1, %v163_v20  ;;  %v160_v28 = vpack.c.bf16 %v146_v26, %v145_v25  ;;  %v422_v30 = vld [vmem:[%s1825_s2] sm:$0xff]  ;;  %v156_v33 = vld [vmem:[%s1824_s1 + $0x68] sm:$0xff]  ;;  %v472_v37 = vsel %vm193_vm0, %v446_v29, 0  ;;  %v424_v39 = vld [vmem:[%s1825_s2 + $0x10] sm:$0xff] }
   0xa   :  { %53 = vperm.xlu1 %1465, %v26_v5   ;;  %50 = vperm.xlu0 %1464, %v25_v6   ;;  %v155_v32 = vld [vmem:[%s1824_s1 + $0x60] sm:$0xff]  ;;  %v438_v34 = vpack.c.bf16 %v423_v31, %v422_v30  ;;  %v30_v35 = vld [vmem:[%s1823_s0 + $0x48] sm:$0xff]  ;;  %v425_v40 = vld [vmem:[%s1825_s2 + $0x18] sm:$0xff] }
   0xb   :  { %1459 = vmatprep.subr.msk.bf16.mxu0 %vm193_vm0, %v446_v29  ;;  %v29_v36 = vld [vmem:[%s1823_s0 + $0x40] sm:$0xff]  ;;  %1317 = vmatprep.mubr.msk.bf16.mxu0 %vm168_vm1, %v159_v27  ;;  %v165_v41 = vpack.c.bf16 %v156_v33, %v155_v32  ;;  %v427_v43 = vld [vmem:[%s1825_s2 + $0x28] sm:$0xff]  ;;  %v32_v44 = vld [vmem:[%s1823_s0 + $0x58] sm:$0xff]  ;;  %v439_v48 = vpack.c.bf16 %v425_v40, %v424_v39 }
   0xc   :  { %1318 = vmatmul.mubr.msk.bf16.vlgmr.msra.gmra.mxu0 %vm168_vm1, %v160_v28  ;;  %v426_v42 = vld [vmem:[%s1825_s2 + $0x20] sm:$0xff]  ;;  %v31_v45 = vld [vmem:[%s1823_s0 + $0x50] sm:$0xff]  ;;  %v158_v47 = vld [vmem:[%s1824_s1 + $0x78] sm:$0xff] }
   0xd   :  { %1352 = vmatpush3.bf16.msra.mxu0 %v472_v37  ;;  %1353 = vmatprep.mubr.msk.bf16.mxu0 %vm168_vm1, %v438_v34  ;;  %v157_v46 = vld [vmem:[%s1824_s1 + $0x70] sm:$0xff]  ;;  %v440_v49 = vpack.c.bf16 %v427_v43, %v426_v42  ;;  %v34_v50 = vld [vmem:[%s1823_s0 + $0x68] sm:$0xff]  ;;  %v33_v51 = vld [vmem:[%s1823_s0 + $0x60] sm:$0xff] }
   0xe   :  { %59 = vperm.xlu1 %1465, %v28_v18   ;;  %56 = vperm.xlu0 %1464, %v27_v19   ;;  %v166_v52 = vpack.c.bf16 %v158_v47, %v157_v46 }
  0x10   :  { %1326 = vmatmul.mubr.msk.bf16.gmra.mxu1 %vm168_vm1, %v164_v38 }
  0x11   :  { %1329 = vmatprep.mubr.msk.bf16.mxu1 %vm168_vm1, %v165_v41 }
  0x12   :  { %65 = vperm.xlu1 %1465, %v30_v35   ;;  %62 = vperm.xlu0 %1464, %v29_v36  }
  0x16   :  { %71 = vperm.xlu1 %1465, %v32_v44   ;;  %68 = vperm.xlu0 %1464, %v31_v45  }
  0x17   :  { %9 = vsyncpa [#allocation3], 0  ;;  %1354 = vmatmul.mubr.msk.bf16.vlgmr.msra.gmra.mxu0 %vm168_vm1, %v439_v48  ;;  %v428_v53 = vld [vmem:[%s1825_s2 + $0x30] sm:$0xff]  ;;  %v429_v54 = vld [vmem:[%s1825_s2 + $0x38] sm:$0xff]  ;;  %v19_v7 = vlaneseq  ;;  %vm300_vm6 = vcmask 130048   ;;  %v1504_v13 = vmov 0.0  }
  0x18   :  { %1357 = vmatprep.mubr.msk.bf16.mxu0 %vm168_vm1, %v440_v49  ;;  %v430_v55 = vld [vmem:[%s1825_s2 + $0x40] sm:$0xff]  ;;  %v431_v56 = vld [vmem:[%s1825_s2 + $0x48] sm:$0xff]  ;;  %v36_v57 = vld [vmem:[%s1823_s0 + $0x78] sm:$0xff]  ;;  %1330 = vmatmul.mubr.msk.bf16.gmra.mxu1 %vm168_vm1, %v166_v52  ;;  %v441_v59 = vpack.c.bf16 %v429_v54, %v428_v53  ;;  %s1506_s29 = smov [#allocation2]  }
  0x19   :  { %v35_v58 = vld [vmem:[%s1823_s0 + $0x70] sm:$0xff]  ;;  %v442_v60 = vpack.c.bf16 %v431_v56, %v430_v55  ;;  %v433_v62 = vld [vmem:[%s1825_s2 + $0x58] sm:$0xff]  ;;  %v434_v63 = vld [vmem:[%s1825_s2 + $0x60] sm:$0xff]  ;;  %v1709_v8 = vand.u32 127, %v19_v7  ;;  %s1163_s30 = sshll.u32 %s1506_s29, 4  ;;  %s1164_s30 = int_to_ptr.vmem [resolvable:$true] %s1163_s30 }
  0x1a   :  { %77 = vperm.xlu1 %1465, %v34_v50   ;;  %74 = vperm.xlu0 %1464, %v33_v51   ;;  %v432_v61 = vld [vmem:[%s1825_s2 + $0x50] sm:$0xff]  ;;  %v435_v0 = vld [vmem:[%s1825_s2 + $0x68] sm:$0xff]  ;;  %v437_v4 = vld [vmem:[%s1825_s2 + $0x78] sm:$0xff]  ;;  %s1481_s0 = scalar_lea.vmem %s1164_s30, 16  ;;  %s1485_s5 = scalar_lea.vmem %s1164_s30, 32 }
  0x1b   :  { %v443_v1 = vpack.c.bf16 %v433_v62, %v432_v61  ;;  %v444_v2 = vpack.c.bf16 %v435_v0, %v434_v63  ;;  %v436_v3 = vld [vmem:[%s1825_s2 + $0x70] sm:$0xff]  ;;  %v1468_v22 = vld [vmem:[%s1826_s3 + $0x8] sm:$0xff]   ;;  %v1469_v51 = vld [vmem:[%s1826_s3] sm:$0xff]   ;;  %p1482_p0 = scmp.ne.s32.totalorder %s1164_s30, %s1481_s0  ;;  %p1486_p1 = scmp.lt.s32.totalorder %s1164_s30, %s1164_s30 }
  0x1c   :  { %v445_v5 = vpack.c.bf16 %v437_v4, %v436_v3  ;;  %v1467_v6 = vld [vmem:[%s1826_s3 + $0x10] sm:$0xff]   ;;  %v1470_v52 = vld [vmem:[%s1826_s3 + $0x28] sm:$0xff]   ;;  %v1471_v53 = vld [vmem:[%s1826_s3 + $0x20] sm:$0xff]   ;;  %p1487_p2 = scmp.lt.s32.totalorder %s1485_s5, %s1481_s0 }
  0x1d   :  { %1369 = vmatprep.subr.bf16.mxu1 %v1467_v6  ;;  %1391 = vmatprep.subr.bf16.mxu0 %v1470_v52 }
  0x1e   :  { %83 = vperm.xlu1 %1465, %v36_v57   ;;  %80 = vperm.xlu0 %1464, %v35_v58   ;;  %p1488_p3 = por %p1487_p2, %p1486_p1 }
  0x1f   :  { %1358 = vmatmul.mubr.msk.bf16.gmra.mxu0 %vm168_vm1, %v441_v59 }
  0x20   :  { %1361 = vmatprep.mubr.msk.bf16.mxu0 %vm168_vm1, %v442_v60  ;;  %1392 = vmatpush3.bf16.msra.mxu0 %v1470_v52  ;;  %p1489_p4 = pnand %p1488_p3, %p1482_p0 }
  0x21   :  { %1393 = vmatprep.subr.bf16.mxu0 %v1471_v53 }
  0x24   :  { %1394 = vmatpush3.bf16.msra.mxu0 %v1471_v53 }
  0x27   :  { %1362 = vmatmul.mubr.msk.bf16.gmra.mxu0 %vm168_vm1, %v443_v1 }
  0x28   :  { %1365 = vmatprep.mubr.msk.bf16.mxu0 %vm168_vm1, %v444_v2 }
  0x2f   :  { %1366 = vmatmul.mubr.msk.bf16.gmra.mxu0 %vm168_vm1, %v445_v5 }
  0x7d   :  { %v45_v9 = vpop.permute.xlu1 %44  ;;  %v39_v10 = vpop.permute.xlu0 %38 }
  0x7e   :  { %vm87_vm2 = vcmp.eq.s32.totalorder %v1709_v8, %v45_v9  ;;  %vm85_vm3 = vcmp.eq.s32.totalorder %v1709_v8, %v39_v10 }
  0x7f   :  { %v1173_v14 = vsel %vm87_vm2, 1.0, %v1504_v13  ;;  %v1171_v15 = vsel %vm85_vm3, 1.0, %v1504_v13  ;;  %vm619_vm3 = vcmask 392192  }
  0x81   :  { %v48_v11 = vpop.permute.xlu1 %47  ;;  %v42_v12 = vpop.permute.xlu0 %41 }
  0x82   :  { %vm88_vm4 = vcmp.eq.s32.totalorder %v1709_v8, %v48_v11  ;;  %vm86_vm5 = vcmp.eq.s32.totalorder %v1709_v8, %v42_v12 }
  0x83   :  { %v1174_v16 = vsel %vm88_vm4, 1.0, %v1504_v13  ;;  %v1172_v17 = vsel %vm86_vm5, 1.0, %v1504_v13  ;;  %vm1505_vm4 = vmmov 0  }
  0x84   :  { %v134_v18 = vpack.c.bf16 %v1174_v16, %v1173_v14  ;;  %v133_v19 = vpack.c.bf16 %v1172_v17, %v1171_v15 }
  0x85   :  { %v54_v20 = vpop.permute.xlu1 %53  ;;  %v51_v21 = vpop.permute.xlu0 %50 }
  0x86   :  { %vm90_vm7 = vcmp.eq.s32.totalorder %v1709_v8, %v54_v20  ;;  %vm89_vm8 = vcmp.eq.s32.totalorder %v1709_v8, %v51_v21  ;;  %1335 = vmatprep.mubr.msk.bf16.mxu1 %vm300_vm6, %v133_v19 }
  0x87   :  { %v1176_v23 = vsel %vm90_vm7, 1.0, %v1504_v13  ;;  %v1175_v24 = vsel %vm89_vm8, 1.0, %v1504_v13  ;;  %1336 = vmatmul.mubr.msk.bf16.vlgmr.msra.gmra.mxu1 %vm300_vm6, %v134_v18 }
  0x88   :  { %v135_v25 = vpack.c.bf16 %v1176_v23, %v1175_v24  ;;  %1370 = vmatpush3.bf16.msra.mxu1 %v1467_v6 }
  0x89   :  { %v60_v26 = vpop.permute.xlu1 %59  ;;  %v57_v27 = vpop.permute.xlu0 %56  ;;  %1371 = vmatprep.subr.bf16.mxu1 %v1468_v22 }
  0x8a   :  { %vm92_vm9 = vcmp.eq.s32.totalorder %v1709_v8, %v60_v26  ;;  %vm91_vm10 = vcmp.eq.s32.totalorder %v1709_v8, %v57_v27  ;;  %1339 = vmatprep.mubr.msk.bf16.mxu1 %vm300_vm6, %v135_v25 }
  0x8b   :  { %v1178_v28 = vsel %vm92_vm9, 1.0, %v1504_v13  ;;  %v1177_v29 = vsel %vm91_vm10, 1.0, %v1504_v13 }
  0x8c   :  { %v136_v30 = vpack.c.bf16 %v1178_v28, %v1177_v29  ;;  %1372 = vmatpush3.bf16.msra.mxu1 %v1468_v22 }
  0x8d   :  { %v66_v31 = vpop.permute.xlu1 %65  ;;  %v63_v32 = vpop.permute.xlu0 %62  ;;  %1373 = vmatprep.subr.bf16.mxu1 %v1469_v51 }
  0x8e   :  { %vm94_vm11 = vcmp.eq.s32.totalorder %v1709_v8, %v66_v31  ;;  %vm93_vm12 = vcmp.eq.s32.totalorder %v1709_v8, %v63_v32 }
  0x8f   :  { %v1180_v33 = vsel %vm94_vm11, 1.0, %v1504_v13  ;;  %v1179_v34 = vsel %vm93_vm12, 1.0, %v1504_v13  ;;  %1340 = vmatmul.mubr.msk.bf16.gmra.mxu1 %vm300_vm6, %v136_v30 }
  0x90   :  { %v137_v35 = vpack.c.bf16 %v1180_v33, %v1179_v34  ;;  %1374 = vmatpush3.bf16.msra.mxu1 %v1469_v51 }
  0x91   :  { %v72_v36 = vpop.permute.xlu1 %71  ;;  %v69_v37 = vpop.permute.xlu0 %68 }
  0x92   :  { %vm96_vm13 = vcmp.eq.s32.totalorder %v1709_v8, %v72_v36  ;;  %vm95_vm14 = vcmp.eq.s32.totalorder %v1709_v8, %v69_v37  ;;  %1343 = vmatprep.mubr.msk.bf16.mxu1 %vm300_vm6, %v137_v35 }
  0x93   :  { %v1182_v38 = vsel %vm96_vm13, 1.0, %v1504_v13  ;;  %v1181_v39 = vsel %vm95_vm14, 1.0, %v1504_v13 }
  0x94   :  { %v138_v40 = vpack.c.bf16 %v1182_v38, %v1181_v39 }
  0x95   :  { %v78_v41 = vpop.permute.xlu1 %77  ;;  %v75_v42 = vpop.permute.xlu0 %74 }
  0x96   :  { %vm98_vm15 = vcmp.eq.s32.totalorder %v1709_v8, %v78_v41  ;;  %vm97_vm0 = vcmp.eq.s32.totalorder %v1709_v8, %v75_v42 }
  0x97   :  { %v1184_v43 = vsel %vm98_vm15, 1.0, %v1504_v13  ;;  %v1183_v44 = vsel %vm97_vm0, 1.0, %v1504_v13  ;;  %1344 = vmatmul.mubr.msk.bf16.gmra.mxu1 %vm300_vm6, %v138_v40 }
  0x98   :  { %v139_v45 = vpack.c.bf16 %v1184_v43, %v1183_v44 }
  0x99   :  { %v84_v46 = vpop.permute.xlu1 %83  ;;  %v81_v47 = vpop.permute.xlu0 %80 }
  0x9a   :  { %vm100_vm1 = vcmp.eq.s32.totalorder %v1709_v8, %v84_v46  ;;  %vm99_vm2 = vcmp.eq.s32.totalorder %v1709_v8, %v81_v47  ;;  %1347 = vmatprep.mubr.msk.bf16.mxu1 %vm300_vm6, %v139_v45 }
  0x9b   :  { %v1186_v48 = vsel %vm100_vm1, 1.0, %v1504_v13  ;;  %v1185_v49 = vsel %vm99_vm2, 1.0, %v1504_v13 }
  0x9c   :  { %v140_v50 = vpack.c.bf16 %v1186_v48, %v1185_v49 }
  0x9f   :  { %1348 = vmatmul.mubr.msk.bf16.gmra.mxu1 %vm300_vm6, %v140_v50 }
  0xc8   :  { %v1323_v54 = vpop.f32.mrf.mxu1 }
  0xca   :  { %v247_v56 = vpop.f32.mrf.mxu1 }
  0xcc   :  { %v1319_v55 = vpop.f32.mrf.mxu0  ;;  %v1324_v58 = vpop.f32.mrf.mxu1 }
  0xce   :  { %v231_v57 = vpop.f32.mrf.mxu0  ;;  %v250_v60 = vpop.f32.mrf.mxu1 }
  0xd0   :  { %v1320_v59 = vpop.f32.mrf.mxu0  ;;  %v1327_v62 = vpop.f32.mrf.mxu1 }
  0xd2   :  { %v234_v61 = vpop.f32.mrf.mxu0  ;;  %v263_v0 = vpop.f32.mrf.mxu1 }
  0xd4   :  { %v1328_v2 = vpop.f32.mrf.mxu1 }
  0xd6   :  { %v266_v4 = vpop.f32.mrf.mxu1 }
  0xd7   :  { %v1355_v63 = vpop.f32.mrf.mxu0 }
  0xd8   :  { %v1763_v6 = vpop.f32.mrf.mxu1 }
  0xd9   :  { %v508_v1 = vpop.f32.mrf.mxu0 }
  0xda   :  { %v1765_v8 = vpop.f32.mrf.mxu1 }
  0xdb   :  { %v1356_v3 = vpop.f32.mrf.mxu0 }
  0xdc   :  { %v1332_v10 = vpop.f32.mrf.mxu1 }
  0xdd   :  { %v511_v5 = vpop.f32.mrf.mxu0 }
  0xde   :  { %v1767_v12 = vpop.f32.mrf.mxu1 }
  0xdf   :  { %v1359_v7 = vpop.f32.mrf.mxu0 }
  0xe1   :  { %v524_v9 = vpop.f32.mrf.mxu0 }
  0xe3   :  { %v1360_v11 = vpop.f32.mrf.mxu0 }
  0xe5   :  { %v527_v15 = vpop.f32.mrf.mxu0 }
  0xe7   :  { %v1363_v18 = vpop.f32.mrf.mxu0 }
  0xe9   :  { %v540_v26 = vpop.f32.mrf.mxu0 }
  0xeb   :  { %v1364_v34 = vpop.f32.mrf.mxu0 }
  0xed   :  { %v543_v42 = vpop.f32.mrf.mxu0 }
  0xef   :  { %v1367_v50 = vpop.f32.mrf.mxu0 }
 0x147   :  { %v1337_v14 = vpop.f32.mrf.mxu1 }
 0x148   :  { %v368_v21 = vadd.f32 %v1337_v14, %v1319_v55 }
 0x149   :  { %v359_v16 = vpop.f32.mrf.mxu1 }
 0x14a   :  { %v360_v19 = vadd.f32 %v359_v16, %v231_v57  ;;  %v573_v29 = vadd.f32 %v1355_v63, %v368_v21  ;;  %v556_v57 = vpop.f32.mrf.mxu0 }
 0x14b   :  { %v1338_v17 = vpop.f32.mrf.mxu1 }
 0x14c   :  { %v371_v20 = vadd.f32 %v1338_v17, %v1320_v59  ;;  %v571_v27 = vadd.f32 %v508_v1, %v360_v19 }
 0x14d   :  { %v362_v22 = vpop.f32.mrf.mxu1 }
 0x14e   :  { %v363_v23 = vadd.f32 %v362_v22, %v234_v61  ;;  %v574_v24 = vadd.f32 %v1356_v3, %v371_v20 }
 0x14f   :  { %v1341_v25 = vpop.f32.mrf.mxu1 }
 0x150   :  { %v572_v28 = vadd.f32 %v511_v5, %v363_v23  ;;  %v594_v32 = vpack.c.bf16 %v574_v24, %v573_v29  ;;  %v384_v37 = vadd.f32 %v1341_v25, %v1323_v54  ;;  %v1368_v5 = vpop.f32.mrf.mxu0 }
 0x151   :  { %v375_v30 = vpop.f32.mrf.mxu1 }
 0x152   :  { %v593_v31 = vpack.c.bf16 %v572_v28, %v571_v27  ;;  %v376_v35 = vadd.f32 %v375_v30, %v247_v56  ;;  %v577_v45 = vadd.f32 %v1359_v7, %v384_v37 }
 0x153   :  { %v1342_v33 = vpop.f32.mrf.mxu1 }
 0x154   :  { %v387_v36 = vadd.f32 %v1342_v33, %v1324_v58  ;;  %1375 = vmatprep.mubr.msk.bf16.mxu1 %vm619_vm3, %v593_v31  ;;  %v575_v43 = vadd.f32 %v524_v9, %v376_v35 }
 0x155   :  { %v378_v38 = vpop.f32.mrf.mxu1  ;;  %1376 = vmatmul.mubr.msk.bf16.vlgmr.msra.gmra.mxu1 %vm619_vm3, %v594_v32 }
 0x156   :  { %v379_v39 = vadd.f32 %v378_v38, %v250_v60  ;;  %v578_v40 = vadd.f32 %v1360_v11, %v387_v36  ;;  %v559_v11 = vpop.f32.mrf.mxu0 }
 0x157   :  { %v1345_v41 = vpop.f32.mrf.mxu1 }
 0x158   :  { %v576_v44 = vadd.f32 %v527_v15, %v379_v39  ;;  %v596_v48 = vpack.c.bf16 %v578_v40, %v577_v45  ;;  %v400_v53 = vadd.f32 %v1345_v41, %v1327_v62 }
 0x159   :  { %v391_v46 = vpop.f32.mrf.mxu1 }
 0x15a   :  { %v595_v47 = vpack.c.bf16 %v576_v44, %v575_v43  ;;  %v392_v51 = vadd.f32 %v391_v46, %v263_v0  ;;  %v581_v61 = vadd.f32 %v1363_v18, %v400_v53 }
 0x15b   :  { %v1346_v49 = vpop.f32.mrf.mxu1 }
 0x15c   :  { %v403_v52 = vadd.f32 %v1346_v49, %v1328_v2  ;;  %1379 = vmatprep.mubr.msk.bf16.mxu1 %vm619_vm3, %v595_v47  ;;  %v579_v59 = vadd.f32 %v540_v26, %v392_v51 }
 0x15d   :  { %v394_v54 = vpop.f32.mrf.mxu1  ;;  %1380 = vmatmul.mubr.msk.bf16.gmra.mxu1 %vm619_vm3, %v596_v48 }
 0x15e   :  { %v395_v55 = vadd.f32 %v394_v54, %v266_v4  ;;  %v582_v56 = vadd.f32 %v1364_v34, %v403_v52 }
 0x15f   :  { %v1349_v58 = vpop.f32.mrf.mxu1 }
 0x160   :  { %v580_v60 = vadd.f32 %v543_v42, %v395_v55  ;;  %v598_v3 = vpack.c.bf16 %v582_v56, %v581_v61  ;;  %v416_v62 = vadd.f32 %v1349_v58, %v1763_v6  ;;  %v1472_v6 = vld [vmem:[%s1826_s3 + $0x18] sm:$0xff]  }
 0x161   :  { %v407_v63 = vpop.f32.mrf.mxu1  ;;  %1395 = vmatprep.subr.bf16.mxu0 %v1472_v6 }
 0x162   :  { %v597_v1 = vpack.c.bf16 %v580_v60, %v579_v59  ;;  %v408_v0 = vadd.f32 %v407_v63, %v1765_v8  ;;  %v585_v17 = vadd.f32 %v1367_v50, %v416_v62  ;;  %1396 = vmatpush3.bf16.msra.mxu0 %v1472_v6  ;;  %v1473_v8 = vld [vmem:[%s1826_s3 + $0x40] sm:$0xff]   ;;  %v1475_v59 = vld [vmem:[%s1826_s3 + $0x30] sm:$0xff]  }
 0x163   :  { %v1350_v7 = vpop.f32.mrf.mxu1  ;;  %1435 = vmatprep.subr.bf16.mxu0 %v1504_v13  ;;  %1413 = vmatprep.subr.bf16.mxu1 %v1473_v8 }
 0x164   :  { %v419_v2 = vadd.f32 %v1350_v7, %v1332_v10  ;;  %1383 = vmatprep.mubr.msk.bf16.mxu1 %vm619_vm3, %v597_v1  ;;  %v583_v15 = vadd.f32 %v556_v57, %v408_v0  ;;  %v1474_v10 = vld [vmem:[%s1826_s3 + $0x38] sm:$0xff]   ;;  %1414 = vmatpush3.bf16.msra.mxu1 %v1473_v8 }
 0x165   :  { %v410_v9 = vpop.f32.mrf.mxu1  ;;  %1384 = vmatmul.mubr.msk.bf16.gmra.mxu1 %vm619_vm3, %v598_v3  ;;  %1415 = vmatprep.subr.bf16.mxu1 %v1474_v10 }
 0x166   :  { %v411_v4 = vadd.f32 %v410_v9, %v1767_v12  ;;  %v586_v14 = vadd.f32 %v1368_v5, %v419_v2 }
 0x168   :  { %v584_v16 = vadd.f32 %v559_v11, %v411_v4  ;;  %v600_v19 = vpack.c.bf16 %v586_v14, %v585_v17  ;;  %1416 = vmatpush3.bf16.msra.mxu1 %v1474_v10 }
 0x169   :  { %1417 = vmatprep.subr.bf16.mxu1 %v1475_v59 }
 0x16a   :  { %v599_v18 = vpack.c.bf16 %v584_v16, %v583_v15 }
 0x16c   :  { %1387 = vmatprep.mubr.msk.bf16.mxu1 %vm619_vm3, %v599_v18  ;;  %1418 = vmatpush3.bf16.msra.mxu1 %v1475_v59 }
 0x16d   :  { %1388 = vmatmul.mubr.msk.bf16.gmra.mxu1 %vm619_vm3, %v600_v19 }
 0x215   :  { %v1377_v12 = vpop.f32.mrf.mxu1 }
 0x216   :  { %v743_v26 = vmax.f32 %v1377_v12, 0.0 }
 0x217   :  { %v678_v20 = vpop.f32.mrf.mxu1 }
 0x218   :  { %v741_v24 = vmax.f32 %v678_v20, 0.0 }
 0x219   :  { %v1378_v21 = vpop.f32.mrf.mxu1 }
 0x21a   :  { %v744_v22 = vmax.f32 %v1378_v21, 0.0 }
 0x21b   :  { %v681_v23 = vpop.f32.mrf.mxu1 }
 0x21c   :  { %v742_v25 = vmax.f32 %v681_v23, 0.0  ;;  %v764_v29 = vpack.c.bf16 %v744_v22, %v743_v26 }
 0x21d   :  { %v1381_v27 = vpop.f32.mrf.mxu1 }
 0x21e   :  { %v763_v28 = vpack.c.bf16 %v742_v25, %v741_v24  ;;  %v747_v36 = vmax.f32 %v1381_v27, 0.0 }
 0x21f   :  { %v694_v30 = vpop.f32.mrf.mxu1 }
 0x220   :  { %1397 = vmatprep.mubr.msk.bf16.mxu0 %vm619_vm3, %v763_v28  ;;  %v745_v34 = vmax.f32 %v694_v30, 0.0 }
 0x221   :  { %v1382_v31 = vpop.f32.mrf.mxu1  ;;  %1398 = vmatmul.mubr.msk.bf16.vlgmr.msra.gmra.mxu0 %vm619_vm3, %v764_v29 }
 0x222   :  { %v748_v32 = vmax.f32 %v1382_v31, 0.0 }
 0x223   :  { %v697_v33 = vpop.f32.mrf.mxu1 }
 0x224   :  { %v746_v35 = vmax.f32 %v697_v33, 0.0  ;;  %v766_v39 = vpack.c.bf16 %v748_v32, %v747_v36 }
 0x225   :  { %v1385_v37 = vpop.f32.mrf.mxu1 }
 0x226   :  { %v765_v38 = vpack.c.bf16 %v746_v35, %v745_v34  ;;  %v751_v46 = vmax.f32 %v1385_v37, 0.0 }
 0x227   :  { %v710_v40 = vpop.f32.mrf.mxu1 }
 0x228   :  { %1401 = vmatprep.mubr.msk.bf16.mxu0 %vm619_vm3, %v765_v38  ;;  %v749_v44 = vmax.f32 %v710_v40, 0.0 }
 0x229   :  { %v1386_v41 = vpop.f32.mrf.mxu1  ;;  %1402 = vmatmul.mubr.msk.bf16.gmra.mxu0 %vm619_vm3, %v766_v39 }
 0x22a   :  { %v752_v42 = vmax.f32 %v1386_v41, 0.0 }
 0x22b   :  { %v713_v43 = vpop.f32.mrf.mxu1 }
 0x22c   :  { %v750_v45 = vmax.f32 %v713_v43, 0.0  ;;  %v768_v49 = vpack.c.bf16 %v752_v42, %v751_v46 }
 0x22d   :  { %v1389_v47 = vpop.f32.mrf.mxu1 }
 0x22e   :  { %v767_v48 = vpack.c.bf16 %v750_v45, %v749_v44  ;;  %v755_v56 = vmax.f32 %v1389_v47, 0.0 }
 0x22f   :  { %v726_v50 = vpop.f32.mrf.mxu1 }
 0x230   :  { %1405 = vmatprep.mubr.msk.bf16.mxu0 %vm619_vm3, %v767_v48  ;;  %v753_v54 = vmax.f32 %v726_v50, 0.0 }
 0x231   :  { %v1390_v51 = vpop.f32.mrf.mxu1  ;;  %1406 = vmatmul.mubr.msk.bf16.gmra.mxu0 %vm619_vm3, %v768_v49 }
 0x232   :  { %v756_v52 = vmax.f32 %v1390_v51, 0.0 }
 0x233   :  { %v729_v53 = vpop.f32.mrf.mxu1 }
 0x234   :  { %v754_v55 = vmax.f32 %v729_v53, 0.0  ;;  %v770_v58 = vpack.c.bf16 %v756_v52, %v755_v56 }
 0x236   :  { %v769_v57 = vpack.c.bf16 %v754_v55, %v753_v54 }
 0x238   :  { %1409 = vmatprep.mubr.msk.bf16.mxu0 %vm619_vm3, %v769_v57 }
 0x239   :  { %1410 = vmatmul.mubr.msk.bf16.gmra.mxu0 %vm619_vm3, %v770_v58 }
 0x23a   :  { %1451 = vmatprep.mubr.msk.bf16.mxu0 %vm1505_vm4, %v1504_v13 }
 0x2e1   :  { %v1399_v60 = vpop.f32.mrf.mxu0 }
 0x2e2   :  { %v912_v0 = vmax.f32 %v1399_v60, 0.0 }
 0x2e3   :  { %v847_v61 = vpop.f32.mrf.mxu0 }
 0x2e4   :  { %v910_v5 = vmax.f32 %v847_v61, 0.0 }
 0x2e5   :  { %v1400_v63 = vpop.f32.mrf.mxu0 }
 0x2e6   :  { %v913_v1 = vmax.f32 %v1400_v63, 0.0 }
 0x2e7   :  { %v850_v3 = vpop.f32.mrf.mxu0 }
 0x2e8   :  { %v911_v7 = vmax.f32 %v850_v3, 0.0  ;;  %v933_v9 = vpack.c.bf16 %v913_v1, %v912_v0 }
 0x2e9   :  { %v1403_v2 = vpop.f32.mrf.mxu0 }
 0x2ea   :  { %v932_v62 = vpack.c.bf16 %v911_v7, %v910_v5  ;;  %v916_v18 = vmax.f32 %v1403_v2, 0.0 }
 0x2eb   :  { %v863_v4 = vpop.f32.mrf.mxu0 }
 0x2ec   :  { %1419 = vmatprep.mubr.msk.bf16.mxu1 %vm619_vm3, %v932_v62  ;;  %v914_v16 = vmax.f32 %v863_v4, 0.0 }
 0x2ed   :  { %v1404_v11 = vpop.f32.mrf.mxu0  ;;  %1420 = vmatmul.mubr.msk.bf16.vlgmr.msra.gmra.mxu1 %vm619_vm3, %v933_v9 }
 0x2ee   :  { %v917_v14 = vmax.f32 %v1404_v11, 0.0 }
 0x2ef   :  { %v866_v15 = vpop.f32.mrf.mxu0 }
 0x2f0   :  { %v915_v17 = vmax.f32 %v866_v15, 0.0  ;;  %v935_v8 = vpack.c.bf16 %v917_v14, %v916_v18  ;;  %v1476_v18 = vld [vmem:[%s1826_s3 + $0x48] sm:$0xff]  }
 0x2f1   :  { %v1407_v19 = vpop.f32.mrf.mxu0 }
 0x2f2   :  { %v934_v6 = vpack.c.bf16 %v915_v17, %v914_v16  ;;  %v920_v24 = vmax.f32 %v1407_v19, 0.0 }
 0x2f3   :  { %v879_v10 = vpop.f32.mrf.mxu0 }
 0x2f4   :  { %1423 = vmatprep.mubr.msk.bf16.mxu1 %vm619_vm3, %v934_v6  ;;  %v918_v22 = vmax.f32 %v879_v10, 0.0 }
 0x2f5   :  { %v1408_v12 = vpop.f32.mrf.mxu0  ;;  %1424 = vmatmul.mubr.msk.bf16.gmra.mxu1 %vm619_vm3, %v935_v8 }
 0x2f6   :  { %v921_v20 = vmax.f32 %v1408_v12, 0.0 }
 0x2f7   :  { %v882_v21 = vpop.f32.mrf.mxu0 }
 0x2f8   :  { %v919_v23 = vmax.f32 %v882_v21, 0.0  ;;  %v937_v27 = vpack.c.bf16 %v921_v20, %v920_v24 }
 0x2f9   :  { %v1411_v25 = vpop.f32.mrf.mxu0 }
 0x2fa   :  { %v936_v26 = vpack.c.bf16 %v919_v23, %v918_v22  ;;  %v924_v34 = vmax.f32 %v1411_v25, 0.0 }
 0x2fb   :  { %v895_v28 = vpop.f32.mrf.mxu0 }
 0x2fc   :  { %1427 = vmatprep.mubr.msk.bf16.mxu1 %vm619_vm3, %v936_v26  ;;  %v922_v32 = vmax.f32 %v895_v28, 0.0 }
 0x2fd   :  { %v1412_v29 = vpop.f32.mrf.mxu0  ;;  %1428 = vmatmul.mubr.msk.bf16.gmra.mxu1 %vm619_vm3, %v937_v27 }
 0x2fe   :  { %v925_v30 = vmax.f32 %v1412_v29, 0.0 }
 0x2ff   :  { %v898_v31 = vpop.f32.mrf.mxu0 }
 0x300   :  { %v923_v33 = vmax.f32 %v898_v31, 0.0  ;;  %v939_v36 = vpack.c.bf16 %v925_v30, %v924_v34 }
 0x302   :  { %v938_v35 = vpack.c.bf16 %v923_v33, %v922_v32 }
 0x304   :  { %1431 = vmatprep.mubr.msk.bf16.mxu1 %vm619_vm3, %v938_v35 }
 0x305   :  { %1432 = vmatmul.mubr.msk.bf16.gmra.mxu1 %vm619_vm3, %v939_v36 }
 0x3ad   :  { %v1421_v37 = vpop.f32.mrf.mxu1 }
 0x3ae   :  { %v1081_v40 = vmax.f32 %v1421_v37, 0.0 }
 0x3af   :  { %v1016_v38 = vpop.f32.mrf.mxu1 }
 0x3b0   :  { %v1079_v43 = vmax.f32 %v1016_v38, 0.0 }
 0x3b1   :  { %v1422_v39 = vpop.f32.mrf.mxu1 }
 0x3b2   :  { %v1082_v41 = vmax.f32 %v1422_v39, 0.0 }
 0x3b3   :  { %v1019_v42 = vpop.f32.mrf.mxu1 }
 0x3b4   :  { %v1098_v44 = vpack.c.bf16 %v1082_v41, %v1081_v40  ;;  %v1080_v45 = vmax.f32 %v1019_v42, 0.0 }
 0x3b5   :  { %v1425_v46 = vpop.f32.mrf.mxu1 }
 0x3b6   :  { %v1097_v47 = vpack.c.bf16 %v1080_v45, %v1079_v43  ;;  %v1085_v11 = vmax.f32 %v1425_v46, 0.0 }
 0x3b7   :  { %v1032_v48 = vpop.f32.mrf.mxu1 }
 0x3b8   :  { %v1083_v16 = vmax.f32 %v1032_v48, 0.0 }
 0x3b9   :  { %v1426_v49 = vpop.f32.mrf.mxu1 }
 0x3ba   :  { %v1086_v4 = vmax.f32 %v1426_v49, 0.0 }
 0x3bb   :  { %v1035_v50 = vpop.f32.mrf.mxu1 }
 0x3bc   :  { %v1100_v14 = vpack.c.bf16 %v1086_v4, %v1085_v11  ;;  %v1084_v15 = vmax.f32 %v1035_v50, 0.0 }
 0x3bd   :  { %v1429_v51 = vpop.f32.mrf.mxu1 }
 0x3be   :  { %v1089_v7 = vmax.f32 %v1429_v51, 0.0  ;;  %v1099_v17 = vpack.c.bf16 %v1084_v15, %v1083_v16 }
 0x3bf   :  { %v1048_v52 = vpop.f32.mrf.mxu1 }
 0x3c0   :  { %v1087_v62 = vmax.f32 %v1048_v52, 0.0 }
 0x3c1   :  { %v1430_v53 = vpop.f32.mrf.mxu1 }
 0x3c2   :  { %v1090_v5 = vmax.f32 %v1430_v53, 0.0 }
 0x3c3   :  { %v1051_v54 = vpop.f32.mrf.mxu1 }
 0x3c4   :  { %v1102_v0 = vpack.c.bf16 %v1090_v5, %v1089_v7  ;;  %v1088_v2 = vmax.f32 %v1051_v54, 0.0 }
 0x3c5   :  { %v1433_v55 = vpop.f32.mrf.mxu1 }
 0x3c6   :  { %v1093_v58 = vmax.f32 %v1433_v55, 0.0  ;;  %v1101_v9 = vpack.c.bf16 %v1088_v2, %v1087_v62 }
 0x3c7   :  { %v1064_v56 = vpop.f32.mrf.mxu1 }
 0x3c8   :  { %v1091_v1 = vmax.f32 %v1064_v56, 0.0 }
 0x3c9   :  { %v1434_v57 = vpop.f32.mrf.mxu1 }
 0x3ca   :  { %v1094_v59 = vmax.f32 %v1434_v57, 0.0 }
 0x3cb   :  { %v1067_v61 = vpop.f32.mrf.mxu1 }
 0x3cc   :  { %v1104_v60 = vpack.c.bf16 %v1094_v59, %v1093_v58  ;;  %v1092_v63 = vmax.f32 %v1067_v61, 0.0 }
 0x3ce   :  { %1436 = vmatpush3.bf16.xpose.msra.mxu0 %v1104_v60  ;;  %v1103_v3 = vpack.c.bf16 %v1092_v63, %v1091_v1 }
 0x3cf   :  { %1437 = vmatprep.subr.bf16.mxu0 %v1504_v13 }
 0x3d6   :  { %1438 = vmatpush3.bf16.xpose.msra.mxu0 %v1103_v3 }
 0x3d7   :  { %1439 = vmatprep.subr.bf16.mxu0 %v1504_v13 }
 0x3de   :  { %1440 = vmatpush3.bf16.xpose.msra.mxu0 %v1102_v0 }
 0x3df   :  { %1441 = vmatprep.subr.bf16.mxu0 %v1504_v13 }
 0x3e6   :  { %1442 = vmatpush3.bf16.xpose.msra.mxu0 %v1101_v9 }
 0x3e7   :  { %1443 = vmatprep.subr.bf16.mxu0 %v1504_v13 }
 0x3ee   :  { %1444 = vmatpush3.bf16.xpose.msra.mxu0 %v1100_v14 }
 0x3ef   :  { %1445 = vmatprep.subr.bf16.mxu0 %v1504_v13 }
 0x3f6   :  { %1446 = vmatpush3.bf16.xpose.msra.mxu0 %v1099_v17 }
 0x3f7   :  { %1447 = vmatprep.subr.bf16.mxu0 %v1504_v13 }
 0x3fe   :  { %1448 = vmatpush3.bf16.xpose.msra.mxu0 %v1098_v44 }
 0x3ff   :  { %1449 = vmatprep.subr.bf16.mxu0 %v1504_v13 }
 0x406   :  { %1450 = vmatpush3.bf16.xpose.msra.mxu0 %v1097_v47 }
 0x40d   :  { %1452 = vmatmul.mubr.bf16.vlgmr.msra.gmra.mxu0 %v1476_v18 }
 0x4cd   :  { %v1145_v19 = vpop.f32.mrf.mxu0 }
 0x4ce   :  { %v1151_v6 = vsub.f32 0.0, %v1145_v19 }
 0x4cf   :  { %v1453_v8 = vpop.f32.mrf.mxu0 }
 0x4d0   :  { %v1152_v10 = vmul.f32 1.442695, %v1151_v6 }
 0x4d1   :  { %v1148_v12 = vpop.f32.mrf.mxu0 }
 0x4d2   :  { %1477 = vpow2.f32 %v1152_v10 }
 0x4d3   :  { %v1454_v20 = vpop.f32.mrf.mxu0 }
 0x4df   :  { %v1478_v21 = vpop.eup %1477 }
 0x4e0   :  { %v1154_v22 = vadd.f32 1.0, %v1478_v21 }
 0x4e2   :  { %1479 = vrcp.f32 %v1154_v22 }
 0x4ef   :  { %v1480_v13 = vpop.eup %1479 }
 0x4f0   :  { %1156 = vst [vmem:[#allocation2] sm:$0x1] %v1480_v13 }
 0x4f1   :  { %1492 = shalt.err (!%p1489_p4)
}
 0x4f2   :  { %1166 = dma.vmem_to_hbm [thread:$0]  %s1164_s30, 16, %s1827_s4, [#allocation3]  }
 0x4f3   :  { %1501 = dma.done.wait [#allocation3], 16  }
 0x4f4   :  { %1502 = vsyncadd [#allocation3], 4294967280 }
 0x4f5   :  { %1170 = vsyncpa [#allocation3], 1 }

</bundles_post_ra>
